<compile_context>
chip_gen: v5e
topology: v5e:2x2
jax: 0.10.0
libtpu: 0.0.40
codegen_flags: <defaults>
</compile_context>

<pallas_src>
import jax
import jax.numpy as jnp
from jax import lax
from jax.experimental import pallas as pl
from jax.experimental.pallas import tpu as pltpu


def _style_loss_kernel(x_ref, t_ref, gin_ref, gt_ref):
    """Grid = (k_split, batch, hw_tiles).  One (1, b, TK) chunk per step.

    x_ref, t_ref : (1, b, TK)      VMEM tiles of input / target features
    gin_ref      : (1, 1, b, b)    unscaled Gram partial of input  (f32)
    gt_ref       : (1, 1, b, b)    unscaled Gram partial of target (f32)

    The output blocks' index_maps are constant in the last grid axis, so they
    stay resident in VMEM across k and serve directly as the accumulators.
    """
    k = pl.program_id(2)

    @pl.when(k == 0)
    def _():
        gin_ref[...] = jnp.zeros_like(gin_ref)
        gt_ref[...] = jnp.zeros_like(gt_ref)

    x = x_ref[0]          # (b, TK)
    t = t_ref[0]          # (b, TK)

    # Gram accumulation on the MXU: contract the lane (hw) axis of both
    # operands directly -- no explicit transpose of the wide tile.
    dn = (((1,), (1,)), ((), ()))
    gin_ref[0, 0] += lax.dot_general(x, x, dn, preferred_element_type=jnp.float32)
    gt_ref[0, 0] += lax.dot_general(t, t, dn, preferred_element_type=jnp.float32)


def _vmem_params():
    """Generation-aware (budget, vmem_limit) in bytes.

    v7x:  64 MiB/TC physical  -> budget ~24 MiB, limit 48 MiB
    v5e/v6e: 128 MiB physical -> budget ~48 MiB, limit 96 MiB
    """
    cap = 64 << 20
    try:
        info = pltpu.get_tpu_info()
        cap = int(getattr(info, "vmem_capacity_bytes", cap) or cap)
    except Exception:
        pass
    vmem_limit = min(cap * 3 // 4, 96 << 20)
    budget = min(cap * 3 // 8, 48 << 20)
    return budget, vmem_limit


def _pick_tk(b, hw, *, bytes_per_elem, budget_bytes, n_buffers=2):
    """Largest lane-aligned K tile whose pipelined input footprint
    (2 inputs x n_buffers x b x TK x bytes) fits the budget.

    Prefers multiples of 512 (lane quantum 128 + MXU K cadence + >=2 KiB
    contiguous DMA rows); never below 128.  No divide-hw search: the wrapper
    zero-pads hw up to a multiple of the returned TK instead.
    """
    denom = 2 * n_buffers * max(b, 1) * bytes_per_elem
    max_tk = max(128, budget_bytes // denom)
    if max_tk >= 512:
        max_tk = (max_tk // 512) * 512
    else:
        max_tk = (max_tk // 128) * 128
    hw128 = ((hw + 127) // 128) * 128
    return min(hw128, max_tk)


def style_loss_forward(x, targets, weight, *, use_bf16=False):
    """Pallas implementation of StyleLoss.forward.

    x, targets : (a, b, c, d) float32, NCHW
    Returns (output, loss, G_input, G_target) where output == x (clone).
    If use_bf16, the feature tiles are streamed as bfloat16 (f32 accumulation).
    """
    assert x.shape == targets.shape, "expand_as broadcast unsupported"
    a, b, c, d = x.shape
    hw = c * d
    scale = float(weight) / float(b * c * d)

    compute_dtype = jnp.bfloat16 if use_bf16 else x.dtype
    xf = x.reshape(a, b, hw).astype(compute_dtype)
    tf = targets.reshape(a, b, hw).astype(compute_dtype)

    budget, vmem_limit = _vmem_params()
    bpe = jnp.dtype(compute_dtype).itemsize
    tk = _pick_tk(b, hw, bytes_per_elem=bpe, budget_bytes=budget)

    kt = -(-hw // tk)                       # ceil-div: number of K tiles
    # v7x has 2 TCs/chip; when a == 1 the batch axis leaves one idle, so split
    # the associative hw reduction across a leading "parallel" axis.
    n_split = 2 if (a == 1 and kt >= 2) else 1
    kt = -(-kt // n_split) * n_split
    hw_pad = kt * tk
    kt_split = kt // n_split

    if hw_pad != hw:
        # Zero columns contribute nothing to the Gram matrices.
        pad = ((0, 0), (0, 0), (0, hw_pad - hw))
        xf = jnp.pad(xf, pad)
        tf = jnp.pad(tf, pad)

    out_shapes = (
        jax.ShapeDtypeStruct((n_split, a, b, b), jnp.float32),   # unscaled Gram(input)
        jax.ShapeDtypeStruct((n_split, a, b, b), jnp.float32),   # unscaled Gram(target)
    )

    grid_spec = pltpu.PrefetchScalarGridSpec(
        num_scalar_prefetch=0,
        grid=(n_split, a, kt_split),
        in_specs=[
            pl.BlockSpec((1, b, tk), lambda s, i, k: (i, 0, s * kt_split + k)),
            pl.BlockSpec((1, b, tk), lambda s, i, k: (i, 0, s * kt_split + k)),
        ],
        out_specs=[
            pl.BlockSpec((1, 1, b, b), lambda s, i, k: (s, i, 0, 0)),
            pl.BlockSpec((1, 1, b, b), lambda s, i, k: (s, i, 0, 0)),
        ],
    )

    gin_parts, gtg_parts = pl.pallas_call(
        _style_loss_kernel,
        out_shape=out_shapes,
        grid_spec=grid_spec,
        compiler_params=pltpu.CompilerParams(
            dimension_semantics=("parallel", "parallel", "arbitrary"),
            vmem_limit_bytes=vmem_limit),
    )(xf, tf)

    # Finalize on tiny (a, b, b) arrays in the wrapper: per-core partial sums,
    # the weight/(b*c*d) scale, and the MSE loss.
    g_in = gin_parts.sum(axis=0) * scale
    g_tg = gtg_parts.sum(axis=0) * scale
    diff = g_in - g_tg
    loss = jnp.mean(diff * diff)

    # The module's returned "clone" is semantically the input itself (JAX
    # arrays are immutable, so an alias is equivalent to PyTorch's clone()).
    output = x
    return output, loss, g_in, g_tg


def _reference(x, targets, weight):
    a, b, c, d = x.shape
    f = x.reshape(a, b, c * d).astype(jnp.float32)
    ft = targets.reshape(a, b, c * d).astype(jnp.float32)
    g_in = jnp.einsum("aij,akj->aik", f, f) / (b * c * d) * weight
    g_tg = jnp.einsum("aij,akj->aik", ft, ft) / (b * c * d) * weight
    loss = jnp.mean((g_in - g_tg) ** 2)
    return x, loss, g_in, g_tg


if __name__ == "__main__":
    key = jax.random.PRNGKey(0)
    k1, k2 = jax.random.split(key)
    a, b, c, d = 2, 4, 16, 16
    weight = 1000.0

    x = jax.random.normal(k1, (a, b, c, d), dtype=jnp.float32)
    t = jax.random.normal(k2, (a, b, c, d), dtype=jnp.float32)

    # f32 path: bit-faithful to the PyTorch module semantics.
    out, loss, g_in, g_tg = style_loss_forward(x, t, weight)
    jax.block_until_ready((out, loss, g_in, g_tg))

    r_out, r_loss, r_gin, r_gtg = _reference(x, t, weight)

    assert jnp.allclose(out, r_out, atol=1e-6), "output (clone) mismatch"
    assert jnp.allclose(g_in, r_gin, rtol=1e-5, atol=1e-4), "G_input mismatch"
    assert jnp.allclose(g_tg, r_gtg, rtol=1e-5, atol=1e-4), "G_target mismatch"
    assert jnp.allclose(loss, r_loss, rtol=1e-5, atol=1e-4), "loss mismatch"

    # bf16 fast path (mem-bound kernel => ~2x less HBM traffic); looser tols
    # because the feature tiles are rounded to bfloat16 before the f32 MXU
    # accumulation.
    out_h, loss_h, g_in_h, g_tg_h = style_loss_forward(x, t, weight, use_bf16=True)
    jax.block_until_ready((out_h, loss_h, g_in_h, g_tg_h))
    assert jnp.allclose(g_in_h, r_gin, rtol=3e-2, atol=1.0), "bf16 G_input mismatch"
    assert jnp.allclose(g_tg_h, r_gtg, rtol=3e-2, atol=1.0), "bf16 G_target mismatch"
    assert jnp.allclose(loss_h, r_loss, rtol=2e-1, atol=1.0), "bf16 loss mismatch"

    print("KERNEL_OK")
</pallas_src>

<mosaic_0001>
module attributes {stable_mosaic.version = 11 : i64} {
  func.func @_style_loss_kernel(%arg0: i32, %arg1: i32, %arg2: i32, %arg3: memref<1x4x256xf32, #tpu.memory_space<vmem>>, %arg4: memref<1x4x256xf32, #tpu.memory_space<vmem>>, %arg5: memref<1x1x4x4xf32, #tpu.memory_space<vmem>>, %arg6: memref<1x1x4x4xf32, #tpu.memory_space<vmem>>) attributes {dimension_semantics = [#tpu.dimension_semantics<parallel>, #tpu.dimension_semantics<parallel>, #tpu.dimension_semantics<arbitrary>], iteration_bounds = array<i64: 1, 2, 1>, scalar_prefetch = 0 : i64, scratch_operands = 0 : i64, tpu.core_type = #tpu.core_type<tc>, window_params = [{transform_indices = @transform_0, window_bounds = array<i64: 1, 4, 256>}, {transform_indices = @transform_1, window_bounds = array<i64: 1, 4, 256>}, {transform_indices = @transform_2, window_bounds = array<i64: 1, 1, 4, 4>}, {transform_indices = @transform_3, window_bounds = array<i64: 1, 1, 4, 4>}]} {
    %c0_i32 = arith.constant 0 : i32
    %0 = arith.cmpi eq, %arg2, %c0_i32 : i32
    %1 = arith.extui %0 : i1 to i32
    %c0_i32_0 = arith.constant 0 : i32
    %2 = arith.cmpi ne, %1, %c0_i32_0 : i32
    scf.if %2 {
      %cst_23 = arith.constant 0.000000e+00 : f32
      %21 = vector.broadcast %cst_23 : f32 to vector<1x1x4x4xf32>
      %c0_24 = arith.constant 0 : index
      %c0_25 = arith.constant 0 : index
      %c0_26 = arith.constant 0 : index
      %c0_27 = arith.constant 0 : index
      %22 = vector.load %arg5[%c0_24, %c0_25, %c0_26, %c0_27] : memref<1x1x4x4xf32, #tpu.memory_space<vmem>>, vector<1x1x4x4xf32>
      tpu.vector_store %arg5[%c0_24, %c0_25, %c0_26, %c0_27], %21 {strides = array<i32>} : memref<1x1x4x4xf32, #tpu.memory_space<vmem>>, vector<1x1x4x4xf32>,
      %cst_28 = arith.constant 0.000000e+00 : f32
      %23 = vector.broadcast %cst_28 : f32 to vector<1x1x4x4xf32>
      %c0_29 = arith.constant 0 : index
      %c0_30 = arith.constant 0 : index
      %c0_31 = arith.constant 0 : index
      %c0_32 = arith.constant 0 : index
      %24 = vector.load %arg6[%c0_29, %c0_30, %c0_31, %c0_32] : memref<1x1x4x4xf32, #tpu.memory_space<vmem>>, vector<1x1x4x4xf32>
      tpu.vector_store %arg6[%c0_29, %c0_30, %c0_31, %c0_32], %23 {strides = array<i32>} : memref<1x1x4x4xf32, #tpu.memory_space<vmem>>, vector<1x1x4x4xf32>,
    } else {
    }
    %c0 = arith.constant 0 : index
    %c0_1 = arith.constant 0 : index
    %c0_2 = arith.constant 0 : index
    %3 = vector.load %arg3[%c0, %c0_1, %c0_2] : memref<1x4x256xf32, #tpu.memory_space<vmem>>, vector<1x4x256xf32>
    %4 = vector.shape_cast %3 : vector<1x4x256xf32> to vector<4x256xf32>
    %c0_3 = arith.constant 0 : index
    %c0_4 = arith.constant 0 : index
    %c0_5 = arith.constant 0 : index
    %5 = vector.load %arg4[%c0_3, %c0_4, %c0_5] : memref<1x4x256xf32, #tpu.memory_space<vmem>>, vector<1x4x256xf32>
    %6 = vector.shape_cast %5 : vector<1x4x256xf32> to vector<4x256xf32>
    %c0_6 = arith.constant 0 : index
    %c0_7 = arith.constant 0 : index
    %c0_8 = arith.constant 0 : index
    %c0_9 = arith.constant 0 : index
    %7 = vector.load %arg5[%c0_6, %c0_7, %c0_8, %c0_9] : memref<1x1x4x4xf32, #tpu.memory_space<vmem>>, vector<1x1x4x4xf32>
    %8 = vector.shape_cast %7 : vector<1x1x4x4xf32> to vector<4x4xf32>
    %cst = arith.constant dense<0.000000e+00> : vector<4x4xf32>
    %9 = tpu.matmul %4, %4, %cst {dimension_numbers = #tpu.dot_dimension_numbers<[1], [1], [0], [0], [0, 0, 1, 0], [], []>} : vector<4x256xf32>, vector<4x256xf32>, vector<4x4xf32> -> vector<4x4xf32>
    %10 = arith.addf %8, %9 : vector<4x4xf32>
    %c0_10 = arith.constant 0 : index
    %c0_11 = arith.constant 0 : index
    %c0_12 = arith.constant 0 : index
    %c0_13 = arith.constant 0 : index
    %11 = vector.load %arg5[%c0_10, %c0_11, %c0_12, %c0_13] : memref<1x1x4x4xf32, #tpu.memory_space<vmem>>, vector<1x1x4x4xf32>
    %12 = vector.shape_cast %11 : vector<1x1x4x4xf32> to vector<4x4xf32>
    %13 = vector.shape_cast %10 : vector<4x4xf32> to vector<1x1x4x4xf32>
    tpu.vector_store %arg5[%c0_10, %c0_11, %c0_12, %c0_13], %13 {strides = array<i32>} : memref<1x1x4x4xf32, #tpu.memory_space<vmem>>, vector<1x1x4x4xf32>,
    %c0_14 = arith.constant 0 : index
    %c0_15 = arith.constant 0 : index
    %c0_16 = arith.constant 0 : index
    %c0_17 = arith.constant 0 : index
    %14 = vector.load %arg6[%c0_14, %c0_15, %c0_16, %c0_17] : memref<1x1x4x4xf32, #tpu.memory_space<vmem>>, vector<1x1x4x4xf32>
    %15 = vector.shape_cast %14 : vector<1x1x4x4xf32> to vector<4x4xf32>
    %cst_18 = arith.constant dense<0.000000e+00> : vector<4x4xf32>
    %16 = tpu.matmul %6, %6, %cst_18 {dimension_numbers = #tpu.dot_dimension_numbers<[1], [1], [0], [0], [0, 0, 1, 0], [], []>} : vector<4x256xf32>, vector<4x256xf32>, vector<4x4xf32> -> vector<4x4xf32>
    %17 = arith.addf %15, %16 : vector<4x4xf32>
    %c0_19 = arith.constant 0 : index
    %c0_20 = arith.constant 0 : index
    %c0_21 = arith.constant 0 : index
    %c0_22 = arith.constant 0 : index
    %18 = vector.load %arg6[%c0_19, %c0_20, %c0_21, %c0_22] : memref<1x1x4x4xf32, #tpu.memory_space<vmem>>, vector<1x1x4x4xf32>
    %19 = vector.shape_cast %18 : vector<1x1x4x4xf32> to vector<4x4xf32>
    %20 = vector.shape_cast %17 : vector<4x4xf32> to vector<1x1x4x4xf32>
    tpu.vector_store %arg6[%c0_19, %c0_20, %c0_21, %c0_22], %20 {strides = array<i32>} : memref<1x1x4x4xf32, #tpu.memory_space<vmem>>, vector<1x1x4x4xf32>,
    return
  }
  func.func @transform_0(%arg0: i32, %arg1: i32, %arg2: i32) -> (i32, i32, i32) {
    %c1_i32 = arith.constant 1 : i32
    %0 = arith.muli %arg0, %c1_i32 : i32
    %1 = arith.addi %0, %arg2 : i32
    %c0_i32 = arith.constant 0 : i32
    %c0_i32_0 = arith.constant 0 : i32
    return %arg1, %c0_i32, %1 : i32, i32, i32
  }
  func.func @transform_1(%arg0: i32, %arg1: i32, %arg2: i32) -> (i32, i32, i32) {
    %c1_i32 = arith.constant 1 : i32
    %0 = arith.muli %arg0, %c1_i32 : i32
    %1 = arith.addi %0, %arg2 : i32
    %c0_i32 = arith.constant 0 : i32
    %c0_i32_0 = arith.constant 0 : i32
    return %arg1, %c0_i32, %1 : i32, i32, i32
  }
  func.func @transform_2(%arg0: i32, %arg1: i32, %arg2: i32) -> (i32, i32, i32, i32) {
    %c0_i32 = arith.constant 0 : i32
    %c0_i32_0 = arith.constant 0 : i32
    %c0_i32_1 = arith.constant 0 : i32
    return %arg0, %arg1, %c0_i32, %c0_i32_0 : i32, i32, i32, i32
  }
  func.func @transform_3(%arg0: i32, %arg1: i32, %arg2: i32) -> (i32, i32, i32, i32) {
    %c0_i32 = arith.constant 0 : i32
    %c0_i32_0 = arith.constant 0 : i32
    %c0_i32_1 = arith.constant 0 : i32
    return %arg0, %arg1, %c0_i32, %c0_i32_0 : i32, i32, i32, i32
  }
}

</mosaic_0001>

<bundles_post_ra>
// kernel: tpu_custom_call.1
= control target key start
LH: loop header
LB: loop body
LE: loop exit
PB: predicated region body
PF: predicated region fallthrough
CT: control target
= control target key end

     0   :  { %9 = vsyncpa [#allocation3], 0  ;;  %s1037_s0 = inlined_call_operand.hbm [shape: f32[2,4,256], index: 0, kind: input, shape index: {}]   ;;  %s1038_s1 = inlined_call_operand.hbm [shape: f32[2,4,256], index: 1, kind: input, shape index: {}]   ;;  %s1039_s2 = inlined_call_operand.hbm [shape: f32[1,2,4,4], index: 2, kind: output, shape index: {0}]   ;;  %s1040_s3 = inlined_call_operand.hbm [shape: f32[1,2,4,4], index: 3, kind: output, shape index: {1}]  }
   0x1   :  { %11 = vsyncpa [#allocation3 + $0x1], 0 }
   0x2   :  { %12 = vsyncpa [#allocation6], 0 }
   0x3   :  { %14 = vsyncpa [#allocation6 + $0x1], 0 }
   0x4   :  { %15 = vsyncpa [#allocation4], 0 }
   0x5   :  { %17 = vsyncpa [#allocation4 + $0x1], 0 }
   0x6   :  { %18 = vsyncpa [#allocation9], 0 }
   0x7   :  { %20 = vsyncpa [#allocation9 + $0x1], 0  ;;  %s884_s12 = smov 0   ;;  %s886_s13 = smov 0  }
   0x8   :  { %s888_s14 = smov 0   ;;  %s890_s15 = smov 0  }
   0x9   :  { %s892_s16 = smov 0   ;;  %s894_s17 = smov 0  }
   0xa LB: > { %s587_s18 = sadd.s32 4294967295, %s861_s17   ;;  %s588_s19 = sadd.s32 4294967294, %s861_s17   ;;  %s861_s17 = sphi %s894_s17, %s26_s17   ;;  %s857_s16 = sphi %s892_s16, %s1049_s16   ;;  %s853_s15 = sphi %s890_s15, %s1048_s15   ;;  %s849_s14 = sphi %s888_s14, %s1047_s14   ;;  %s845_s13 = sphi %s886_s13, %s1046_s13   ;;  %s841_s12 = sphi %s884_s12, %s1045_s12  }
   0xb   : > { %s41_s20 = sadd.s32 1, %s857_s16  ;;  %s56_s21 = sadd.s32 1, %s849_s14 }
   0xc   : > { %p43_p0 = scmp.ge.s32.totalorder %s41_s20, 2  ;;  %p63_p1 = scmp.ne.s32.totalorder %s849_s14, %s845_s13 }
   0xd   : > { %p64_p2 = scmp.eq.s32.totalorder %s861_s17, 0  ;;  %p69_p3 = scmp.ne.s32.totalorder %s845_s13, %s841_s12 }
   0xe   : > { %s1051_s20 = smov (%p43_p0, %s41_s20), 0  ;;  %p70_p5 = scmp.eq.s32.totalorder %s587_s18, 0 }
   0xf   : > { %p925_p4 = por %p64_p2, %p63_p1  ;;  %s51_s23 = ssub.s32 %s857_s16, %s1051_s20 }
  0x10   : > { %p125_p6 = scmp.eq.s32.totalorder %s587_s18, 1  ;;  %p54_p7 = scmp.eq.s32.totalorder %s51_s23, 0 }
  0x11   : > { %p931_p8 = por %p70_p5, %p69_p3  ;;  %p131_p10 = scmp.eq.s32.totalorder %s588_s19, 1 }
  0x12   : > { %p935_p9 = por %p125_p6, %p63_p1  ;;  %p590_p12 = scmp.ge.s32.totalorder %s861_s17, 2 }
  0x13   : > { %s940_s26 = scalar_select %p54_p7, %s849_s14, %s56_s21  }
  0x14   : > { %p942_p11 = por %p131_p10, %p69_p3  ;;  %p632_p13 = scmp.lt.s32.totalorder %s861_s17, 2 }
  0x15   : > { %s179_s28 = sand.u32 1, %s849_s14   ;;  %s608_s30 = sshll.u32 %s857_s16, 3 }
  0x16   : > { %s591_s29 = sshll.u32 %s179_s28, 3  ;;  %s191_s6 = scalar_lea.hbm %s1037_s0, %s608_s30 }
  0x17   : > { %s183_s7 = scalar_lea.vmem [#allocation2], %s591_s29  ;;  %s193_s9 = sshll.u32 %s191_s6, 4  ;;  %s194_s9 = int_to_ptr.hbm [resolvable:$true] %s193_s9 }
  0x18   : > { %s195_s8 = sshll.u32 %s183_s7, 4  ;;  %p619_p0 = pnand %p632_p13, %p925_p4  ;;  %s196_s8 = int_to_ptr.vmem [resolvable:$true] %s195_s8 }
  0x19   : > { %p597_p1 = scmp.ge.s32.totalorder %s861_s17, 1  ;;  %p223_p2 = scmp.lt.s32.totalorder %s861_s17, 3 }
  0x1a   : > { %s180_s10 = scalar_lea.sflag [#allocation3], %s179_s28  ;;  %s214_s19 = scalar_lea.hbm %s1038_s1, %s608_s30 }
  0x1b   : > { %621 = dma.hbm_to_vmem [thread:$0]  (!%p619_p0), %s194_s9, 128, %s196_s8, %s180_s10  }
  0x1c   : > { %p224_p3 = pnand %p597_p1, %p223_p2  ;;  %s206_s21 = scalar_lea.vmem [#allocation5], %s591_s29 }
  0x1d   : > { %s218_s23 = sshll.u32 %s206_s21, 4  ;;  %s216_s4 = sshll.u32 %s214_s19, 4  ;;  %s219_s23 = int_to_ptr.vmem [resolvable:$true] %s218_s23  ;;  %s217_s4 = int_to_ptr.hbm [resolvable:$true] %s216_s4 }
  0x1e   : > { %s203_s5 = scalar_lea.sflag [#allocation6], %s179_s28  ;;  %227 = sbr.rel (%p224_p3) target bundleno = 213 (0xd5), region = 28 }
  0x1f   : > { %624 = dma.hbm_to_vmem [thread:$0]  (!%p619_p0), %s217_s4, 128, %s219_s23, %s203_s5  }
  0x20   : > { %s961_s22 = sand.u32 (!%p224_p3), 1, %s845_s13  }
  0x21   : > { %s598_s6 = sshll.u32 (!%p224_p3), %s961_s22, 3  ;;  %s230_s7 = scalar_lea.sflag (!%p224_p3), [#allocation3], %s961_s22 }
  0x22   : > { %s233_s8 = scalar_lea.vmem (!%p224_p3), [#allocation2], %s598_s6 }
  0x23   : > { %824 = dma.done.wait (%p931_p8), %s230_s7, 128  }
  0x24   : > { %826 = vsyncadd (%p931_p8), %s230_s7, 4294967168  ;;  %s240_s29 = scalar_lea.sflag [#allocation6], %s961_s22  ;;  %s243_s28 = scalar_lea.vmem [#allocation5], %s598_s6 }
  0x25   : > { %828 = dma.done.wait (%p931_p8), %s240_s29, 128  }
  0x26   : > { %830 = vsyncadd (%p931_p8), %s240_s29, 4294967168  ;;  %v288_v0 = vld [vmem:[%s233_s8] sm:$0xff]  ;;  %v289_v3 = vld [vmem:[%s243_s28] sm:$0xff]  ;;  %s600_s24 = sshll.u32 %s961_s22, 2  ;;  %vm285_vm0 = vcmask 27648   ;;  %v863_v10 = vmov 0.0  }
  0x27   : > { %292 = vst [vmem:[#allocation1] ss:$2 sm:$0xff] %v288_v0  ;;  %s269_s30 = scalar_lea.vmem [#allocation7], %s600_s24  ;;  %s976_s9 = scalar_lea.vmem [#allocation8], %s600_s24 }
  0x28   : > { %286 = vst.msk [vmem:[%s269_s30] sm:$0xf] %vm285_vm0, %v863_v10  ;;  %s604_s10 = sshll.u32 %s853_s15, 2  ;;  %s419_s21 = sshll.u32 %s269_s30, 4  ;;  %s420_s21 = int_to_ptr.vmem [resolvable:$true] %s419_s21 }
  0x29   : > { %287 = vst.msk [vmem:[%s976_s9] sm:$0xf] %vm285_vm0, %v863_v10  ;;  %s417_s19 = scalar_lea.hbm %s1039_s2, %s604_s10  ;;  %s400_s4 = scalar_lea.sflag [#allocation4], %s961_s22 }
  0x2a   : > { %s421_s23 = sshll.u32 %s417_s19, 4  ;;  %s763_s8 = scalar_lea.hbm %s1039_s2, 8  ;;  %s422_s23 = int_to_ptr.hbm [resolvable:$true] %s421_s23 }
  0x2b   : > { %s757_s5 = sshra.s32 %s422_s23, 4  ;;  %s758_s5 = int_to_ptr.hbm [resolvable:$true] %s757_s5 }
  0x2c   : > { %s759_s15 = scalar_lea.hbm %s758_s5, 4  ;;  %p764_p7 = scmp.lt.s32.totalorder %s758_s5, %s1039_s2 }
  0x2d   : > { %p760_p4 = scmp.ne.s32.totalorder %s758_s5, %s759_s15  ;;  %p765_p8 = scmp.lt.s32.totalorder %s763_s8, %s759_s15 }
  0x2e   : > { %v293_v1 = vld.sshfl [vmem:[#allocation1] sm:$0xff pattern:$0x75316420]  ;;  %v294_v2 = vld.sshfl [vmem:[#allocation1 + $0x8] sm:$0xff pattern:$0x75316420] }
  0x2f   : > { %297 = vst [vmem:[#allocation1] ss:$2 sm:$0xff] %v288_v0  ;;  %v290_v12 = vld [vmem:[%s269_s30] sm:$0xf]  ;;  %p761_p5 = pnand %p760_p4, %p935_p9  ;;  %p766_p10 = por %p765_p8, %p764_p7 }
  0x31   : > { %p762_p6 = pneg %p761_p5 }
  0x33   : > { %p767_p13 = pnand %p766_p10, %p762_p6 }
  0x36   : > { %v298_v4 = vld.sshfl [vmem:[#allocation1] sm:$0xff pattern:$0x75316420]  ;;  %v299_v5 = vld.sshfl [vmem:[#allocation1 + $0x8] sm:$0xff pattern:$0x75316420] }
  0x37   : > { %347 = vst [vmem:[#allocation1] ss:$2 sm:$0xff] %v289_v3  ;;  %317 = vmatpush.xpose.msra.mxu0 %v298_v4  ;;  %337 = vmatpush.xpose.msra.mxu1 %v299_v5 }
  0x3a   : > { %318 = vmatmul.f32.vlgmr.msra.gmra.mxu0 %v293_v1  ;;  %338 = vmatmul.f32.vlgmr.msra.gmra.mxu1 %v294_v2 }
  0x3e   : > { %v348_v6 = vld.sshfl [vmem:[#allocation1] sm:$0xff pattern:$0x75316420]  ;;  %v349_v7 = vld.sshfl [vmem:[#allocation1 + $0x8] sm:$0xff pattern:$0x75316420] }
  0x3f   : > { %352 = vst [vmem:[#allocation1] ss:$2 sm:$0xff] %v289_v3 }
  0x46   : > { %v353_v8 = vld.sshfl [vmem:[#allocation1] sm:$0xff pattern:$0x75316420]  ;;  %v354_v9 = vld.sshfl [vmem:[#allocation1 + $0x8] sm:$0xff pattern:$0x75316420] }
  0x47   : > { %372 = vmatpush.xpose.msra.mxu2 %v353_v8  ;;  %392 = vmatpush.xpose.msra.mxu3 %v354_v9 }
  0x4a   : > { %373 = vmatmul.f32.vlgmr.msra.gmra.mxu2 %v348_v6  ;;  %393 = vmatmul.f32.vlgmr.msra.gmra.mxu3 %v349_v7 }
  0xb7   : > { %v319_v11 = vpop.f32.mrf.mxu0  ;;  %v339_v13 = vpop.f32.mrf.mxu1 }
  0xb8   : > { %v340_v14 = vadd.f32 %v339_v13, %v319_v11 }
  0xba   : > { %v342_v15 = vadd.f32 %v340_v14, %v290_v12 }
  0xbc   : > { %344 = vst.msk [vmem:[%s269_s30] sm:$0xf] %vm285_vm0, %v342_v15 }
  0xbd   : > { %770 = shalt.err (!%p767_p13)
}
  0xbe   : > { %614 = dma.vmem_to_hbm [thread:$0]  (%p935_p9), %s420_s21, 64, %s422_s23, %s400_s4   ;;  %v345_v17 = vld [vmem:[%s976_s9] sm:$0xf] }
  0xbf   : > { %s433_s11 = scalar_lea.hbm %s1040_s3, %s604_s10  ;;  %s435_s18 = sshll.u32 %s976_s9, 4  ;;  %s436_s18 = int_to_ptr.vmem [resolvable:$true] %s435_s18 }
  0xc0   : > { %s437_s19 = sshll.u32 %s433_s11, 4  ;;  %s405_s5 = scalar_lea.sflag [#allocation9], %s961_s22  ;;  %s438_s19 = int_to_ptr.hbm [resolvable:$true] %s437_s19 }
  0xc1   : > { %s785_s15 = sshra.s32 %s438_s19, 4  ;;  %s791_s4 = scalar_lea.hbm %s1040_s3, 8  ;;  %s786_s15 = int_to_ptr.hbm [resolvable:$true] %s785_s15 }
  0xc2   : > { %s787_s21 = scalar_lea.hbm %s786_s15, 4  ;;  %p792_p3 = scmp.lt.s32.totalorder %s786_s15, %s1040_s3 }
  0xc3   : > { %p788_p0 = scmp.ne.s32.totalorder %s786_s15, %s787_s21  ;;  %p793_p4 = scmp.lt.s32.totalorder %s791_s4, %s787_s21 }
  0xc5   : > { %p789_p1 = pnand %p788_p0, %p935_p9  ;;  %p794_p5 = por %p793_p4, %p792_p3 }
  0xc7   : > { %p790_p2 = pneg %p789_p1 }
  0xc9   : > { %p795_p6 = pnand %p794_p5, %p790_p2 }
  0xcd   : > { %v374_v16 = vpop.f32.mrf.mxu2  ;;  %v394_v18 = vpop.f32.mrf.mxu3 }
  0xce   : > { %v395_v19 = vadd.f32 %v394_v18, %v374_v16 }
  0xd0   : > { %v397_v20 = vadd.f32 %v395_v19, %v345_v17 }
  0xd2   : > { %398 = vst.msk [vmem:[%s976_s9] sm:$0xf] %vm285_vm0, %v397_v20 }
  0xd3   : > { %798 = shalt.err (!%p795_p6)
}
  0xd4   : > { %615 = dma.vmem_to_hbm [thread:$0]  (%p935_p9), %s436_s18, 64, %s438_s19, %s405_s5  }
  0xd5 PF: > { %s449_s22 = sand.u32 1, %s841_s12   ;;  %p626_p7 = pnand %p590_p12, %p942_p11 }
  0xd6   : > { %s450_s9 = scalar_lea.sflag [#allocation4], %s449_s22 }
  0xd7   : > { %p627_p8 = pneg %p626_p7 }
  0xd9   : > { %832 = dma.done.wait (%p627_p8), %s450_s9, 64  }
  0xda   : > { %834 = vsyncadd (%p627_p8), %s450_s9, 4294967232  ;;  %s460_s8 = scalar_lea.sflag [#allocation9], %s449_s22 }
  0xdb   : > { %836 = dma.done.wait (%p627_p8), %s460_s8, 64  }
  0xdc   : > { %838 = vsyncadd (%p627_p8), %s460_s8, 4294967232  ;;  %s26_s17 = sadd.s32 1, %s861_s17   ;;  %s1045_s12 = smov %s845_s13 }
  0xdd   : > { %p23_p10 = scmp.ge.s32.totalorder %s26_s17, 4   ;;  %s1046_s13 = smov %s849_s14 }
  0xde   : > { %s1047_s14 = smov %s940_s26  ;;  %s1048_s15 = smov %s857_s16 }
  0xdf   : > { %s1049_s16 = smov %s1051_s20  ;;  %25 = sbr.rel (!%p23_p10) target bundleno = 10 (0xa), region = 107 }
  0xe4   :  { %466 = vsyncpa [#allocation3], 1 }
  0xe5   :  { %468 = vsyncpa [#allocation3 + $0x1], 1 }
  0xe6   :  { %469 = vsyncpa [#allocation6], 1 }
  0xe7   :  { %471 = vsyncpa [#allocation6 + $0x1], 1 }
  0xe8   :  { %472 = vsyncpa [#allocation4], 1 }
  0xe9   :  { %474 = vsyncpa [#allocation4 + $0x1], 1 }
  0xea   :  { %475 = vsyncpa [#allocation9], 1 }
  0xeb   :  { %477 = vsyncpa [#allocation9 + $0x1], 1 }

</bundles_post_ra>
